<compile_context>
chip_gen: v7x
topology: tpu7x:2x2x1
jax: 0.10.0
libtpu: 0.0.40
codegen_flags: <defaults>
</compile_context>

<pallas_src>
import functools
import jax
import jax.numpy as jnp
from jax.experimental import pallas as pl
from jax.experimental.pallas import tpu as pltpu

LN_EPS = 1e-12


def _gelu(x):
    # tanh-approximate GELU (original BERT "gelu_new").
    # TODO(synk): HF BertIntermediate default is erf-based exact GELU; tanh approx used
    #             here since erf lowering in Mosaic is not guaranteed (diff < 1e-3).
    c = jnp.float32(0.7978845608028654)  # sqrt(2/pi)
    return 0.5 * x * (1.0 + jnp.tanh(c * (x + 0.044715 * x * x * x)))


def _pick_tile(dim, pref, align):
    """Largest multiple of `align` <= pref that divides dim; else full dim."""
    if dim <= pref:
        return dim
    t = (pref // align) * align
    while t >= align:
        if dim % t == 0:
            return t
        t -= align
    return dim


# ------------------------- Pallas kernels -------------------------

def _linear_g_kernel(x_ref, w_ref, b_ref, o_ref, acc_ref, *, act):
    """Grouped tiled matmul: grid = (G, M/tm, N/tn, K/tk); K is the reduction axis."""
    k = pl.program_id(3)

    @pl.when(k == 0)
    def _():
        acc_ref[...] = jnp.zeros_like(acc_ref)

    # bf16 MXU inputs, f32 accumulation.
    acc_ref[...] += jnp.dot(x_ref[0].astype(jnp.bfloat16),
                            w_ref[0].astype(jnp.bfloat16),
                            preferred_element_type=jnp.float32)

    @pl.when(k == pl.num_programs(3) - 1)
    def _():
        y = acc_ref[...] + b_ref[0].astype(jnp.float32)   # (tm, tn) + (1, tn)
        if act == "gelu":
            y = _gelu(y)
        elif act == "tanh":
            y = jnp.tanh(y)
        o_ref[0] = y.astype(o_ref.dtype)


def linear_g(x, w, b, act="none", out_dtype=jnp.bfloat16,
             tm_pref=256, tn_pref=256, tk_pref=256):
    """x: (G, M, K), w: (G, K, N), b: (G, 1, N) -> (G, M, N)."""
    G, M, K = x.shape
    N = w.shape[2]
    tm = _pick_tile(M, tm_pref, 8)
    tn = _pick_tile(N, tn_pref, 128)
    tk = _pick_tile(K, tk_pref, 128)
    return pl.pallas_call(
        functools.partial(_linear_g_kernel, act=act),
        out_shape=jax.ShapeDtypeStruct((G, M, N), out_dtype),
        grid=(G, M // tm, N // tn, K // tk),
        in_specs=[pl.BlockSpec((1, tm, tk), lambda g, i, j, k: (g, i, k)),
                  pl.BlockSpec((1, tk, tn), lambda g, i, j, k: (g, k, j)),
                  pl.BlockSpec((1, 1, tn), lambda g, i, j, k: (g, 0, j))],
        out_specs=pl.BlockSpec((1, tm, tn), lambda g, i, j, k: (g, i, j)),
        scratch_shapes=[pltpu.VMEM((tm, tn), jnp.float32)],
        compiler_params=pltpu.CompilerParams(
            dimension_semantics=("parallel", "parallel", "parallel", "arbitrary")),
    )(x, w, b)


def _linear_res_ln_kernel(x_ref, w_ref, b_ref, r_ref, g_ref, be_ref, o_ref, acc_ref):
    """Fused (x @ w + b + residual) -> LayerNorm. N (=hidden) kept whole for the LN
    reduction; grid = (G, M/tm, K/tk)."""
    k = pl.program_id(2)

    @pl.when(k == 0)
    def _():
        acc_ref[...] = jnp.zeros_like(acc_ref)

    acc_ref[...] += jnp.dot(x_ref[0].astype(jnp.bfloat16),
                            w_ref[0].astype(jnp.bfloat16),
                            preferred_element_type=jnp.float32)

    @pl.when(k == pl.num_programs(2) - 1)
    def _():
        y = acc_ref[...] + b_ref[0].astype(jnp.float32) + r_ref[0].astype(jnp.float32)
        mu = jnp.mean(y, axis=-1, keepdims=True)
        yc = y - mu
        var = jnp.mean(yc * yc, axis=-1, keepdims=True)
        yn = yc * jax.lax.rsqrt(var + LN_EPS)
        o_ref[0] = (yn * g_ref[0].astype(jnp.float32)
                    + be_ref[0].astype(jnp.float32)).astype(o_ref.dtype)


def linear_res_ln(x, w, b, res, gamma, beta, out_dtype=jnp.bfloat16,
                  tm_pref=256, tk_pref=256):
    """LayerNorm(x @ w + b + res); x: (G, M, K), w: (G, K, H), res: (G, M, H)."""
    G, M, K = x.shape
    H = w.shape[2]
    tm = _pick_tile(M, tm_pref, 8)
    tk = _pick_tile(K, tk_pref, 128)
    return pl.pallas_call(
        _linear_res_ln_kernel,
        out_shape=jax.ShapeDtypeStruct((G, M, H), out_dtype),
        grid=(G, M // tm, K // tk),
        in_specs=[pl.BlockSpec((1, tm, tk), lambda g, i, k: (g, i, k)),
                  pl.BlockSpec((1, tk, H), lambda g, i, k: (g, k, 0)),
                  pl.BlockSpec((1, 1, H), lambda g, i, k: (g, 0, 0)),
                  pl.BlockSpec((1, tm, H), lambda g, i, k: (g, i, 0)),
                  pl.BlockSpec((1, 1, H), lambda g, i, k: (g, 0, 0)),
                  pl.BlockSpec((1, 1, H), lambda g, i, k: (g, 0, 0))],
        out_specs=pl.BlockSpec((1, tm, H), lambda g, i, k: (g, i, 0)),
        scratch_shapes=[pltpu.VMEM((tm, H), jnp.float32)],
        compiler_params=pltpu.CompilerParams(
            dimension_semantics=("parallel", "parallel", "arbitrary")),
    )(x, w, b, res, gamma, beta)


def _attention_kernel(qkv_ref, mask_ref, o_ref, *, num_heads):
    """All heads for one (branch, batch) per grid step; heads split via static lane
    slices of the fused QKV block (no HBM head transposes)."""
    S, H3 = qkv_ref.shape[2], qkv_ref.shape[3]
    H = H3 // 3
    hd = H // num_heads
    qkv = qkv_ref[0, 0]                               # (S, 3H) bf16
    m = mask_ref[0, 0].astype(jnp.float32)            # (1, S) additive mask
    scale = 1.0 / float(hd) ** 0.5
    for h in range(num_heads):                        # static unroll over heads
        q = qkv[:, h * hd:(h + 1) * hd].astype(jnp.bfloat16)
        kk = qkv[:, H + h * hd:H + (h + 1) * hd].astype(jnp.bfloat16)
        v = qkv[:, 2 * H + h * hd:2 * H + (h + 1) * hd].astype(jnp.bfloat16)
        # scores = q @ k^T (contract on head_dim, no materialized transpose)
        s = jax.lax.dot_general(q, kk, (((1,), (1,)), ((), ())),
                                preferred_element_type=jnp.float32) * scale
        s = s + m                                     # broadcast over query rows
        s = s - jnp.max(s, axis=-1, keepdims=True)
        p = jnp.exp(s)
        # reciprocal on the EUP slot instead of a VPU divide
        p = p * pl.reciprocal(jnp.sum(p, axis=-1, keepdims=True), approx=True)
        o = jnp.dot(p.astype(jnp.bfloat16), v, preferred_element_type=jnp.float32)
        o_ref[0, 0, :, h * hd:(h + 1) * hd] = o.astype(o_ref.dtype)


def attention(qkv, mask, num_heads, out_dtype=jnp.bfloat16):
    """qkv: (G, B, S, 3H) fused projections; mask: (B, 1, 1, S) additive.
    Returns context (G, B, S, H)."""
    G, B, S, H3 = qkv.shape
    H = H3 // 3
    return pl.pallas_call(
        functools.partial(_attention_kernel, num_heads=num_heads),
        out_shape=jax.ShapeDtypeStruct((G, B, S, H), out_dtype),
        grid=(G, B),
        in_specs=[pl.BlockSpec((1, 1, S, H3), lambda g, b: (g, b, 0, 0)),
                  pl.BlockSpec((1, 1, 1, S), lambda g, b: (b, 0, 0, 0))],
        out_specs=pl.BlockSpec((1, 1, S, H), lambda g, b: (g, b, 0, 0)),
        compiler_params=pltpu.CompilerParams(
            dimension_semantics=("parallel", "parallel")),
    )(qkv, mask)


def _pool_cls_kernel(x_ref, wp_ref, bp_ref, wc_ref, bc_ref, pooled_ref, logits_ref):
    """Fused BertPooler (dense + tanh on CLS token) + classifier, batched over
    all count*B rows."""
    x = x_ref[...].astype(jnp.bfloat16)
    pooled = jnp.tanh(jnp.dot(x, wp_ref[...].astype(jnp.bfloat16),
                              preferred_element_type=jnp.float32)
                      + bp_ref[...].astype(jnp.float32))
    logits = (jnp.dot(pooled.astype(jnp.bfloat16), wc_ref[...].astype(jnp.bfloat16),
                      preferred_element_type=jnp.float32)
              + bc_ref[...].astype(jnp.float32))
    pooled_ref[...] = pooled.astype(pooled_ref.dtype)
    logits_ref[...] = logits.astype(logits_ref.dtype)


def pooler_classifier(x, wp, bp, wc, bc):
    """x: (count*B, H) CLS-token activations -> (pooled (M,H), logits (M,L))."""
    M, H = x.shape
    L = wc.shape[1]
    return pl.pallas_call(
        _pool_cls_kernel,
        out_shape=(jax.ShapeDtypeStruct((M, H), jnp.float32),
                   jax.ShapeDtypeStruct((M, L), jnp.float32)),
        grid=(1,),
        in_specs=[pl.BlockSpec((M, H), lambda i: (0, 0)),
                  pl.BlockSpec((H, H), lambda i: (0, 0)),
                  pl.BlockSpec((1, H), lambda i: (0, 0)),
                  pl.BlockSpec((H, L), lambda i: (0, 0)),
                  pl.BlockSpec((1, L), lambda i: (0, 0))],
        out_specs=(pl.BlockSpec((M, H), lambda i: (0, 0)),
                   pl.BlockSpec((M, L), lambda i: (0, 0))),
    )(x, wp, bp, wc, bc)


def _ce_loss_kernel(logits_ref, labels_ref, o_ref, *, count):
    """Sum over `count` branches of CrossEntropyLoss(ignore_index=-1) means.
    Labels are identical across branches, so sum_of_branch_means ==
    count * sum(nll*valid) / sum(valid).  NaN if every label is -1 (matches PyTorch)."""
    logits = logits_ref[...].astype(jnp.float32)      # (count*B, C)
    labels = labels_ref[...]                          # (count*B, 1) int32
    n, c = logits.shape
    m = jnp.max(logits, axis=-1, keepdims=True)
    z = logits - m
    lse = jnp.log(jnp.sum(jnp.exp(z), axis=-1, keepdims=True))
    logp = z - lse
    cls_idx = jax.lax.broadcasted_iota(jnp.int32, (n, c), 1)
    onehot = (cls_idx == labels).astype(jnp.float32)
    valid = (labels != -1).astype(jnp.float32)
    nll = -jnp.sum(logp * onehot, axis=-1, keepdims=True)
    total = jnp.sum(nll * valid, keepdims=True)       # (1, 1)
    cnt = jnp.sum(valid, keepdims=True)               # (1, 1)
    o_ref[...] = float(count) * total / cnt


def ce_loss(logits, labels, count):
    N, C = logits.shape
    out = pl.pallas_call(
        functools.partial(_ce_loss_kernel, count=count),
        out_shape=jax.ShapeDtypeStruct((1, 1), jnp.float32),
        grid=(1,),
        in_specs=[pl.BlockSpec((N, C), lambda i: (0, 0)),
                  pl.BlockSpec((N, 1), lambda i: (0, 0))],
        out_specs=pl.BlockSpec((1, 1), lambda i: (0, 0)),
    )(logits, labels)
    return out[0, 0]


# ------------------------- model glue (plain JAX) -------------------------

def init_linear(key, fan_in, fan_out):
    w = jax.random.normal(key, (fan_in, fan_out), jnp.float32) * 0.02
    return w, jnp.zeros((fan_out,), jnp.float32)


def init_groie(key, count, hidden, inter, num_labels):
    """Per-branch BertLayer weights stacked on a leading `count` axis; QKV fused."""
    ks = jax.random.split(key, count * 6 + 2)
    wqkv, bqkv, wo, bo, wi, bi, w2, b2 = [], [], [], [], [], [], [], []
    ln1_g, ln1_b, ln2_g, ln2_b = [], [], [], []
    for i in range(count):
        kq, kk, kv, ko, ki, k2 = ks[i * 6:(i + 1) * 6]
        wq, bq_ = init_linear(kq, hidden, hidden)
        wk_, bk_ = init_linear(kk, hidden, hidden)
        wv_, bv_ = init_linear(kv, hidden, hidden)
        wqkv.append(jnp.concatenate([wq, wk_, wv_], axis=1))
        bqkv.append(jnp.concatenate([bq_, bk_, bv_], axis=0))
        w, b = init_linear(ko, hidden, hidden); wo.append(w); bo.append(b)
        w, b = init_linear(ki, hidden, inter); wi.append(w); bi.append(b)
        w, b = init_linear(k2, inter, hidden); w2.append(w); b2.append(b)
        ln1_g.append(jnp.ones((hidden,), jnp.float32))
        ln1_b.append(jnp.zeros((hidden,), jnp.float32))
        ln2_g.append(jnp.ones((hidden,), jnp.float32))
        ln2_b.append(jnp.zeros((hidden,), jnp.float32))
    pool_w, pool_b = init_linear(ks[count * 6], hidden, hidden)
    cls_w, cls_b = init_linear(ks[count * 6 + 1], hidden, num_labels)

    def stack_w(lst):                 # matmul weights stored bf16 (MXU input dtype)
        return jnp.stack(lst).astype(jnp.bfloat16)

    def stack_v(lst, n):              # biases / LN params stay f32 (added post-acc)
        return jnp.stack(lst).reshape(count, 1, n).astype(jnp.float32)

    return dict(
        count=count,
        wqkv=stack_w(wqkv), bqkv=stack_v(bqkv, 3 * hidden),
        wo=stack_w(wo), bo=stack_v(bo, hidden),
        ln1_g=stack_v(ln1_g, hidden), ln1_b=stack_v(ln1_b, hidden),
        wi=stack_w(wi), bi=stack_v(bi, inter),
        w2=stack_w(w2), b2=stack_v(b2, hidden),
        ln2_g=stack_v(ln2_g, hidden), ln2_b=stack_v(ln2_b, hidden),
        pool_w=pool_w.astype(jnp.bfloat16), pool_b=pool_b.reshape(1, hidden),
        cls_w=cls_w.astype(jnp.bfloat16), cls_b=cls_b.reshape(1, num_labels),
    )


def groie_forward(params, layers, attention_mask, labels, num_heads):
    """Mirrors GRoIE.forward, with all `count` branches batched on a leading axis."""
    G = params["count"]
    B, S, H = layers[0].shape

    # Branch i consumes layers[-i-1]; stack branches and run them together.
    x = jnp.stack([layers[-i - 1] for i in range(G)], axis=0)      # (G, B, S, H)
    x = x.astype(jnp.bfloat16).reshape(G, B * S, H)

    # Fused QKV projection (one matmul instead of three passes over x).
    qkv = linear_g(x, params["wqkv"], params["bqkv"])              # (G, B*S, 3H) bf16
    ctx = attention(qkv.reshape(G, B, S, 3 * H), attention_mask,
                    num_heads)                                     # (G, B, S, H) bf16
    ctx = ctx.reshape(G, B * S, H)

    # out-proj + residual + LayerNorm fused; FFN1 (gelu); FFN2 + residual + LN fused.
    attn_out = linear_res_ln(ctx, params["wo"], params["bo"], x,
                             params["ln1_g"], params["ln1_b"])     # (G, B*S, H)
    inter = linear_g(attn_out, params["wi"], params["bi"], act="gelu")
    h = linear_res_ln(inter, params["w2"], params["b2"], attn_out,
                      params["ln2_g"], params["ln2_b"])            # (G, B*S, H)

    # BertPooler + classifier, batched over all branches' CLS tokens.
    cls_tok = h.reshape(G, B, S, H)[:, :, 0, :].reshape(G * B, H)
    pooled, logits = pooler_classifier(cls_tok, params["pool_w"], params["pool_b"],
                                       params["cls_w"], params["cls_b"])
    # TODO(synk): GRoIE applies nn.Dropout(p=0.3) to the pooled output during training;
    #             eval-mode identity here.

    num_labels = logits.shape[-1]
    avg_logits = jnp.sum(logits.reshape(G, B, num_labels), axis=0) / G
    embedd = jnp.sum(pooled.reshape(G, B, H), axis=0) / G

    if labels is not None:
        labels_t = jnp.broadcast_to(labels.reshape(1, B), (G, B)).reshape(G * B, 1)
        total_loss = ce_loss(logits, labels_t.astype(jnp.int32), G)
    else:
        total_loss = jnp.zeros((0,), jnp.float32)  # torch.Tensor(0) -> empty tensor
    return total_loss, avg_logits, embedd


if __name__ == "__main__":
    B, S, H, I, NH = 2, 8, 32, 64, 4      # batch, seq, hidden, intermediate, heads
    COUNT, NUM_LABELS = 3, 3

    key = jax.random.PRNGKey(0)
    k_param, k_layers = jax.random.split(key)
    params = init_groie(k_param, COUNT, H, I, NUM_LABELS)

    lkeys = jax.random.split(k_layers, COUNT)
    layers = [jax.random.normal(lkeys[i], (B, S, H), jnp.float32)
              for i in range(COUNT)]

    # HF-style extended additive attention mask: 0 = keep, -10000 = masked
    mask01 = jnp.array([[1.0] * S, [1.0] * (S - 2) + [0.0, 0.0]], jnp.float32)
    attn_mask = (1.0 - mask01)[:, None, None, :] * -10000.0

    labels = jnp.array([1, -1], jnp.int32)  # -1 exercises ignore_index

    total_loss, avg_logits, embedd = groie_forward(params, layers, attn_mask,
                                                   labels, NH)
    jax.block_until_ready((total_loss, avg_logits, embedd))
    assert avg_logits.shape == (B, NUM_LABELS)
    assert embedd.shape == (B, H)
    print("KERNEL_OK")
</pallas_src>

<mosaic_0001>
module attributes {stable_mosaic.version = 11 : i64} {
  func.func @_linear_g_kernel(%arg0: i32, %arg1: i32, %arg2: i32, %arg3: i32, %arg4: memref<1x16x32xbf16, #tpu.memory_space<vmem>>, %arg5: memref<1x32x96xbf16, #tpu.memory_space<vmem>>, %arg6: memref<1x1x96xf32, #tpu.memory_space<vmem>>, %arg7: memref<1x16x96xbf16, #tpu.memory_space<vmem>>, %arg8: memref<16x96xf32, #tpu.memory_space<vmem>>) attributes {dimension_semantics = [#tpu.dimension_semantics<parallel>, #tpu.dimension_semantics<parallel>, #tpu.dimension_semantics<parallel>, #tpu.dimension_semantics<arbitrary>], iteration_bounds = array<i64: 3, 1, 1, 1>, scalar_prefetch = 0 : i64, scratch_operands = 1 : i64, tpu.core_type = #tpu.core_type<tc>, window_params = [{transform_indices = @transform_0, window_bounds = array<i64: 1, 16, 32>}, {transform_indices = @transform_1, window_bounds = array<i64: 1, 32, 96>}, {transform_indices = @transform_2, window_bounds = array<i64: 1, 1, 96>}, {transform_indices = @transform_3, window_bounds = array<i64: 1, 16, 96>}]} {
    %c0_i32 = arith.constant 0 : i32
    %0 = arith.cmpi eq, %arg3, %c0_i32 : i32
    %1 = arith.extui %0 : i1 to i32
    %c0_i32_0 = arith.constant 0 : i32
    %2 = arith.cmpi ne, %1, %c0_i32_0 : i32
    scf.if %2 {
      %cst_12 = arith.constant 0.000000e+00 : f32
      %14 = vector.broadcast %cst_12 : f32 to vector<16x96xf32>
      %c0_13 = arith.constant 0 : index
      %c0_14 = arith.constant 0 : index
      %15 = vector.load %arg8[%c0_13, %c0_14] : memref<16x96xf32, #tpu.memory_space<vmem>>, vector<16x96xf32>
      tpu.vector_store %arg8[%c0_13, %c0_14], %14 {strides = array<i32>} : memref<16x96xf32, #tpu.memory_space<vmem>>, vector<16x96xf32>,
    } else {
    }
    %c0 = arith.constant 0 : index
    %c0_1 = arith.constant 0 : index
    %3 = vector.load %arg8[%c0, %c0_1] : memref<16x96xf32, #tpu.memory_space<vmem>>, vector<16x96xf32>
    %c0_2 = arith.constant 0 : index
    %c0_3 = arith.constant 0 : index
    %c0_4 = arith.constant 0 : index
    %4 = vector.load %arg4[%c0_2, %c0_3, %c0_4] : memref<1x16x32xbf16, #tpu.memory_space<vmem>>, vector<1x16x32xbf16>
    %5 = vector.shape_cast %4 : vector<1x16x32xbf16> to vector<16x32xbf16>
    %c0_5 = arith.constant 0 : index
    %c0_6 = arith.constant 0 : index
    %c0_7 = arith.constant 0 : index
    %6 = vector.load %arg5[%c0_5, %c0_6, %c0_7] : memref<1x32x96xbf16, #tpu.memory_space<vmem>>, vector<1x32x96xbf16>
    %7 = vector.shape_cast %6 : vector<1x32x96xbf16> to vector<32x96xbf16>
    %cst = arith.constant dense<0.000000e+00> : vector<16x96xf32>
    %8 = tpu.matmul %5, %7, %cst {dimension_numbers = #tpu.dot_dimension_numbers<[1], [0], [0], [1], [0, 0, 1, 1], [], []>} : vector<16x32xbf16>, vector<32x96xbf16>, vector<16x96xf32> -> vector<16x96xf32>
    %9 = arith.addf %3, %8 : vector<16x96xf32>
    %c0_8 = arith.constant 0 : index
    %c0_9 = arith.constant 0 : index
    %10 = vector.load %arg8[%c0_8, %c0_9] : memref<16x96xf32, #tpu.memory_space<vmem>>, vector<16x96xf32>
    tpu.vector_store %arg8[%c0_8, %c0_9], %9 {strides = array<i32>} : memref<16x96xf32, #tpu.memory_space<vmem>>, vector<16x96xf32>,
    %c0_i32_10 = arith.constant 0 : i32
    %11 = arith.cmpi eq, %arg3, %c0_i32_10 : i32
    %12 = arith.extui %11 : i1 to i32
    %c0_i32_11 = arith.constant 0 : i32
    %13 = arith.cmpi ne, %12, %c0_i32_11 : i32
    scf.if %13 {
      %c0_12 = arith.constant 0 : index
      %c0_13 = arith.constant 0 : index
      %14 = vector.load %arg8[%c0_12, %c0_13] : memref<16x96xf32, #tpu.memory_space<vmem>>, vector<16x96xf32>
      %c0_14 = arith.constant 0 : index
      %c0_15 = arith.constant 0 : index
      %c0_16 = arith.constant 0 : index
      %15 = vector.load %arg6[%c0_14, %c0_15, %c0_16] : memref<1x1x96xf32, #tpu.memory_space<vmem>>, vector<1x1x96xf32>
      %16 = vector.shape_cast %15 : vector<1x1x96xf32> to vector<1x96xf32>
      %17 = vector.broadcast %16 : vector<1x96xf32> to vector<16x96xf32>
      %18 = arith.addf %14, %17 : vector<16x96xf32>
      %19 = arith.truncf %18 : vector<16x96xf32> to vector<16x96xbf16>
      %c0_17 = arith.constant 0 : index
      %c0_18 = arith.constant 0 : index
      %c0_19 = arith.constant 0 : index
      %20 = vector.load %arg7[%c0_17, %c0_18, %c0_19] : memref<1x16x96xbf16, #tpu.memory_space<vmem>>, vector<1x16x96xbf16>
      %21 = vector.shape_cast %20 : vector<1x16x96xbf16> to vector<16x96xbf16>
      %22 = vector.shape_cast %19 : vector<16x96xbf16> to vector<1x16x96xbf16>
      tpu.vector_store %arg7[%c0_17, %c0_18, %c0_19], %22 {strides = array<i32>} : memref<1x16x96xbf16, #tpu.memory_space<vmem>>, vector<1x16x96xbf16>,
    } else {
    }
    return
  }
  func.func @transform_0(%arg0: i32, %arg1: i32, %arg2: i32, %arg3: i32) -> (i32, i32, i32) {
    %c0_i32 = arith.constant 0 : i32
    return %arg0, %arg1, %arg3 : i32, i32, i32
  }
  func.func @transform_1(%arg0: i32, %arg1: i32, %arg2: i32, %arg3: i32) -> (i32, i32, i32) {
    %c0_i32 = arith.constant 0 : i32
    return %arg0, %arg3, %arg2 : i32, i32, i32
  }
  func.func @transform_2(%arg0: i32, %arg1: i32, %arg2: i32, %arg3: i32) -> (i32, i32, i32) {
    %c0_i32 = arith.constant 0 : i32
    %c0_i32_0 = arith.constant 0 : i32
    return %arg0, %c0_i32, %arg2 : i32, i32, i32
  }
  func.func @transform_3(%arg0: i32, %arg1: i32, %arg2: i32, %arg3: i32) -> (i32, i32, i32) {
    %c0_i32 = arith.constant 0 : i32
    return %arg0, %arg1, %arg2 : i32, i32, i32
  }
}

</mosaic_0001>

<bundles_post_ra>
// kernel: tpu_custom_call.1
= control target key start
LH: loop header
LB: loop body
LE: loop exit
PB: predicated region body
PF: predicated region fallthrough
CT: control target
= control target key end

     0   :  { %8 = vsyncpa [#allocation4], 0  ;;  %s1097_s0 = inlined_call_operand.hbm [shape: bf16[3,16,32], index: 0, kind: input, shape index: {}]   ;;  %s1098_s1 = inlined_call_operand.hbm [shape: bf16[3,32,96], index: 1, kind: input, shape index: {}]   ;;  %s1099_s2 = inlined_call_operand.vmem [shape: f32[3,1,96], index: 2, kind: input, shape index: {}]   ;;  %s1100_s3 = inlined_call_operand.hbm [shape: bf16[3,16,96], index: 3, kind: output, shape index: {}]  }
   0x1   :  { %10 = vsyncpa [#allocation4 + $0x1], 0 }
   0x2   :  { %11 = vsyncpa [#allocation7], 0 }
   0x3   :  { %13 = vsyncpa [#allocation7 + $0x1], 0 }
   0x4   :  { %14 = vsyncpa [#allocation5], 0 }
   0x5   :  { %16 = vsyncpa [#allocation5 + $0x1], 0  ;;  %s855_s12 = smov 0   ;;  %s857_s13 = smov 0  }
   0x6   :  { %s859_s14 = smov 0   ;;  %s861_s15 = smov 0  }
   0x7   :  { %s863_s16 = smov 0   ;;  %s865_s17 = smov 0  }
   0x8 LB: > { %s560_s18 = sadd.s32 4294967295, %s824_s17   ;;  %s561_s19 = sadd.s32 4294967294, %s824_s17   ;;  %s824_s17 = sphi %s865_s17, %s22_s17   ;;  %s820_s16 = sphi %s863_s16, %s1117_s16   ;;  %s816_s15 = sphi %s861_s15, %s1116_s15   ;;  %s812_s14 = sphi %s859_s14, %s1115_s14   ;;  %s808_s13 = sphi %s857_s13, %s1114_s13   ;;  %s804_s12 = sphi %s855_s12, %s1113_s12  }
   0x9   : > { %s48_s20 = sadd.s32 1, %s820_s16  ;;  %s59_s21 = sadd.s32 1, %s812_s14 }
   0xa   : > { %p50_p0 = scmp.ge.s32.totalorder %s48_s20, 3  ;;  %p66_p1 = scmp.ne.s32.totalorder %s812_s14, %s808_s13 }
   0xb   : > { %p67_p2 = scmp.eq.s32.totalorder %s824_s17, 0  ;;  %p72_p3 = scmp.ne.s32.totalorder %s808_s13, %s804_s12 }
   0xc   : > { %s1119_s20 = smov (%p50_p0, %s48_s20), 0  ;;  %p73_p5 = scmp.eq.s32.totalorder %s560_s18, 0 }
   0xd   : > { %p896_p4 = por %p67_p2, %p66_p1  ;;  %s52_s23 = ssub.s32 %s820_s16, %s1119_s20 }
   0xe   : > { %p158_p6 = scmp.eq.s32.totalorder %s560_s18, 2  ;;  %p57_p7 = scmp.eq.s32.totalorder %s52_s23, 0 }
   0xf   : > { %p902_p8 = por %p73_p5, %p72_p3  ;;  %p164_p10 = scmp.eq.s32.totalorder %s561_s19, 2 }
  0x10   : > { %p906_p9 = por %p158_p6, %p66_p1  ;;  %p619_p12 = scmp.lt.s32.totalorder %s824_s17, 3 }
  0x11   : > { %s1104_s24 = scalar_select %p902_p8, 1, 0 }
  0x12   : > { %s1105_s25 = scalar_select %p906_p9, 1, 0 }
  0x13   : > { %s911_s26 = scalar_select %p57_p7, %s812_s14, %s59_s21  }
  0x14   : > { %p913_p11 = por %p164_p10, %p72_p3  ;;  %s919_s28 = sand.u32 1, %s812_s14  }
  0x15   : > { %s564_s29 = sshll.u32 %s919_s28, 3  ;;  %s586_s30 = sshll.u32 %s820_s16, 7 }
  0x16   : > { %s1106_s27 = scalar_select %p913_p11, 1, 0 }
  0x17   : > { %s926_s6 = scalar_lea.hbm %s1097_s0, %s586_s30  ;;  %s188_s7 = scalar_lea.vmem [#allocation3], %s564_s29 }
  0x18   : > { %s198_s8 = sshll.u32 %s188_s7, 4  ;;  %p932_p13 = pnand %p619_p12, %p896_p4  ;;  %s928_s8 = int_to_ptr.vmem [resolvable:$true] %s198_s8 }
  0x19   : > { %s185_s10 = scalar_lea.sflag [#allocation4], %s919_s28  ;;  %s678_s11 = scalar_lea.hbm %s926_s6, 128 }
  0x1a   : > { %p679_p1 = scmp.ne.s32.totalorder %s926_s6, %s678_s11  ;;  %p680_p2 = pneg %p932_p13 }
  0x1b   : > { %s683_s21 = scalar_lea.hbm %s1097_s0, 384  ;;  %p684_p4 = scmp.lt.u32.totalorder %s926_s6, %s1097_s0 }
  0x1c   : > { %p681_p3 = pnand %p680_p2, %p679_p1  ;;  %p685_p6 = scmp.lt.u32.totalorder %s683_s21, %s678_s11 }
  0x1d   : > { %p687_p10 = scmp.lt.u32.totalorder %s678_s11, %s926_s6 }
  0x1e   : > { %p682_p5 = pneg %p681_p3  ;;  %p686_p7 = por %p685_p6, %p684_p4 }
  0x20   : > { %p688_p12 = por %p687_p10, %p686_p7 }
  0x22   : > { %p689_p0 = pnand %p688_p12, %p682_p5 }
  0x24   : > { %692 = shalt.err (!%p689_p0)
}
  0x25   : > { %s693_s29 = scalar_lea.vmem %s928_s8, 128  ;;  %s826_s30 = smov [#allocation3]  }
  0x26   : > { %p694_p1 = scmp.ne.s32.totalorder %s928_s8, %s693_s29  ;;  %s698_s4 = sshll.u32 %s826_s30, 4  ;;  %s699_s4 = int_to_ptr.vmem [resolvable:$false] %s698_s4 }
  0x27   : > { %s700_s5 = scalar_lea.vmem %s699_s4, 256  ;;  %p701_p9 = scmp.lt.s32.totalorder %s928_s8, %s699_s4 }
  0x28   : > { %p696_p3 = pnand %p694_p1, %p680_p2  ;;  %p702_p4 = scmp.lt.s32.totalorder %s700_s5, %s693_s29 }
  0x2a   : > { %p697_p11 = pneg %p696_p3  ;;  %p703_p6 = por %p702_p4, %p701_p9 }
  0x2c   : > { %p704_p7 = pnand %p703_p6, %p697_p11 }
  0x2e   : > { %707 = shalt.err (!%p704_p7)
}
  0x2f   : > { %s827_s7 = smov 64   ;;  %s828_s11 = smov 4  }
  0x30   : > { %611 = dma.hbm_to_vmem [thread:$0]  (!%p932_p13), %s926_s6, 128, %s928_s8, %s185_s10, %s827_s7, %s827_s7, %s828_s11  }
  0x31   : > { %p239_p9 = scmp.lt.s32.totalorder %s824_s17, 4  ;;  %s567_s18 = sshll.u32 %s919_s28, 4 }
  0x32   : > { %s587_s19 = sshll.u32 %s820_s16, 8  ;;  %p1108_p11 = scmp.ge.s32.totalorder %s824_s17, 1 }
  0x33   : > { %s980_s29 = scalar_lea.hbm %s1098_s1, %s587_s19  ;;  %s212_s30 = scalar_lea.vmem [#allocation6], %s567_s18 }
  0x34   : > { %p973_p0 = pnand %p1108_p11, %p239_p9  ;;  %s222_s4 = sshll.u32 %s212_s30, 4  ;;  %s982_s4 = int_to_ptr.vmem [resolvable:$true] %s222_s4 }
  0x35   : > { %s209_s6 = scalar_lea.sflag [#allocation7], %s919_s28  ;;  %s708_s8 = scalar_lea.hbm %s980_s29, 256 }
  0x36   : > { %p709_p5 = scmp.ne.s32.totalorder %s980_s29, %s708_s8  ;;  %s713_s19 = scalar_lea.hbm %s1098_s1, 768 }
  0x37   : > { %p714_p1 = scmp.lt.u32.totalorder %s980_s29, %s1098_s1  ;;  %p715_p3 = scmp.lt.u32.totalorder %s713_s19, %s708_s8 }
  0x38   : > { %p711_p10 = pnand %p709_p5, %p680_p2  ;;  %p717_p6 = scmp.lt.u32.totalorder %s708_s8, %s980_s29 }
  0x39   : > { %p716_p4 = por %p715_p3, %p714_p1 }
  0x3a   : > { %p712_p12 = pneg %p711_p10 }
  0x3b   : > { %p718_p7 = por %p717_p6, %p716_p4 }
  0x3d   : > { %p719_p9 = pnand %p718_p7, %p712_p12 }
  0x3f   : > { %722 = shalt.err (!%p719_p9)
}
  0x40   : > { %s723_s18 = scalar_lea.vmem %s982_s4, 256  ;;  %s829_s30 = smov [#allocation6]  }
  0x41   : > { %p724_p11 = scmp.ne.s32.totalorder %s982_s4, %s723_s18  ;;  %s728_s10 = sshll.u32 %s829_s30, 4  ;;  %s729_s10 = int_to_ptr.vmem [resolvable:$false] %s728_s10 }
  0x42   : > { %s730_s5 = scalar_lea.vmem %s729_s10, 512  ;;  %p731_p8 = scmp.lt.s32.totalorder %s982_s4, %s729_s10 }
  0x43   : > { %p726_p5 = pnand %p724_p11, %p680_p2  ;;  %p732_p1 = scmp.lt.s32.totalorder %s730_s5, %s723_s18 }
  0x45   : > { %p727_p10 = pneg %p726_p5  ;;  %p733_p3 = por %p732_p1, %p731_p8 }
  0x47   : > { %p734_p4 = pnand %p733_p3, %p727_p10 }
  0x49   : > { %737 = shalt.err (!%p734_p4)
}
  0x4a   : > { %614 = dma.hbm_to_vmem [thread:$0]  (!%p932_p13), %s980_s29, 256, %s982_s4, %s209_s6, %s827_s7, %s827_s7, %s828_s11  }
  0x4b   : > { %243 = sbr.rel (%p973_p0) target bundleno = 338 (0x152), region = 32  ;;  %s1016_s8 = sand.u32 (!%p973_p0), 1, %s808_s13  }
  0x4c   : > { %s571_s19 = sshll.u32 (!%p973_p0), %s1016_s8, 3  ;;  %s246_s9 = scalar_lea.sflag (!%p973_p0), [#allocation4], %s1016_s8 }
  0x4d   : > { %s249_s22 = scalar_lea.vmem (!%p973_p0), [#allocation3], %s571_s19  ;;  %p1110_p8 = scmp.ne.s32.totalorder (!%p973_p0), %s1104_s24, 0 }
  0x52   : > { %791 = dma.done.wait (%p1110_p8), %s246_s9, 128  }
  0x53   : > { %793 = vsyncadd (%p1110_p8), %s246_s9, 4294967168  ;;  %s572_s28 = sshll.u32 %s1016_s8, 4  ;;  %s255_s7 = scalar_lea.sflag [#allocation7], %s1016_s8 }
  0x54   : > { %s258_s11 = scalar_lea.vmem [#allocation6], %s572_s28 }
  0x55   : > { %795 = dma.done.wait (%p1110_p8), %s255_s7, 256  }
  0x56   : > { %797 = vsyncadd (%p1110_p8), %s255_s7, 4294967040  ;;  %vm306_vm0 = vcmask 785408   ;;  %v830_v0 = vmov 0.0   ;;  %vm831_vm1 = vmmov 0   ;;  %v675_v1 = vld [vmem:[%s258_s11] sm:$0xff]   ;;  %v676_v2 = vld [vmem:[%s258_s11 + $0x8] sm:$0xff]  }
  0x57   : > { %307 = vst.msk [vmem:[#allocation2] sm:$0xff] %vm306_vm0, %v830_v0  ;;  %308 = vst.msk [vmem:[#allocation2 + $0x8] sm:$0xff] %vm306_vm0, %v830_v0  ;;  %594 = vmatprep.subr.bf16.mxu0 %v830_v0  ;;  %598 = vmatprep.mubr.msk.bf16.mxu0 %vm831_vm1, %v830_v0  ;;  %v677_v3 = vld [vmem:[%s249_s22] sm:$0xff]   ;;  %vm334_vm2 = vcmask 261120   ;;  %p294_p13 = scmp.lt.s32.totalorder %s816_s15, 2  ;;  %s590_s6 = sshll.u32 %s816_s15, 7 }
  0x58   : > { %595 = vmatpush3.bf16.msra.mxu0 %v675_v1  ;;  %s291_s23 = scalar_lea.vmem [#allocation8], %s571_s19  ;;  %vm406_vm3 = vcmask 781312   ;;  %s1047_s5 = scalar_lea.hbm %s1100_s3, %s590_s6 }
  0x59   : > { %596 = vmatprep.subr.bf16.mxu0 %v830_v0  ;;  %s295_s24 = scalar_select %p294_p13, %s816_s15, 2 }
  0x5a   : > { %s426_s18 = sshll.u32 %s291_s23, 4  ;;  %s410_s15 = scalar_lea.sflag [#allocation5], %s1016_s8  ;;  %s1049_s18 = int_to_ptr.vmem [resolvable:$true] %s426_s18 }
  0x5b   : > { %s299_s4 = scalar_lea.vmem %s1099_s2, %s295_s24  ;;  %s738_s19 = scalar_lea.vmem %s1049_s18, 128 }
  0x5c   : > { %597 = vmatpush3.bf16.msra.mxu0 %v676_v2  ;;  %v578_v12 = vld [vmem:[%s299_s4] ss:$0 sm:$0xff]  ;;  %p739_p2 = scmp.ne.s32.totalorder %s1049_s18, %s738_s19  ;;  %p1111_p0 = scmp.ne.s32.totalorder %s1105_s25, 0 }
  0x5d   : > { %s832_s9 = smov [#allocation8]  }
  0x5e   : > { %v309_v4 = vld [vmem:[#allocation2] sm:$0xff]  ;;  %v310_v6 = vld [vmem:[#allocation2 + $0x8] sm:$0xff]  ;;  %p740_p12 = pnand %p739_p2, %p1111_p0  ;;  %s742_s22 = sshll.u32 %s832_s9, 4  ;;  %s743_s22 = int_to_ptr.vmem [resolvable:$false] %s742_s22 }
  0x5f   : > { %599 = vmatmul.mubr.msk.bf16.vlgmr.msra.gmra.mrb[0].mxu0 %vm334_vm2, %v677_v3  ;;  %s744_s28 = scalar_lea.vmem %s743_s22, 256  ;;  %p745_p7 = scmp.lt.s32.totalorder %s1049_s18, %s743_s22 }
  0x60   : > { %p741_p6 = pneg %p740_p12  ;;  %p746_p9 = scmp.lt.s32.totalorder %s744_s28, %s738_s19 }
  0x62   : > { %p747_p11 = por %p746_p9, %p745_p7 }
  0x64   : > { %p748_p5 = pnand %p747_p11, %p741_p6 }
 0x132   : > { %v372_v5 = vpop.f32.mrb[0].mxu0 }
 0x133   : > { %v379_v7 = vadd.f32 %v372_v5, %v309_v4  ;;  %v600_v8 = vpop.f32.mrb[1].mxu0 }
 0x134   : > { %v375_v9 = vpop.f32.mrb[2].mxu0 }
 0x135   : > { %382 = vst.msk [vmem:[#allocation2] sm:$0xff] %vm306_vm0, %v379_v7  ;;  %v380_v10 = vadd.f32 %v375_v9, %v310_v6  ;;  %v601_v11 = vpop.f32.mrb[3].mxu0 }
 0x137   : > { %383 = vst.msk [vmem:[#allocation2 + $0x8] sm:$0xff] %vm306_vm0, %v380_v10 }
 0x13c   : > { %v387_v13 = vld [vmem:[#allocation2] sm:$0xff] }
 0x13d   : > { %v396_v14 = vadd.f32 %v578_v12, %v387_v13 }
 0x13e   : > { %v388_v15 = vld [vmem:[#allocation2 + $0x8] sm:$0xff] }
 0x13f   : > { %v397_v16 = vadd.f32 %v578_v12, %v388_v15  ;;  %v588_v17 = vpack.c.bf16 %v396_v14, %v396_v14 }
 0x141   : > { %v589_v18 = vpack.c.bf16 %v397_v16, %v397_v16  ;;  %407 = vst.msk [vmem:[%s291_s23] sm:$0xf] %vm406_vm3, %v588_v17 }
 0x143   : > { %408 = vst.msk [vmem:[%s291_s23 + $0x4] sm:$0xf] %vm406_vm3, %v589_v18 }
 0x144   : > { %751 = shalt.err (!%p748_p5)
}
 0x145   : > { %s752_s7 = scalar_lea.hbm %s1047_s5, 128  ;;  %s756_s21 = scalar_lea.hbm %s1100_s3, 384 }
 0x146   : > { %p753_p10 = scmp.ne.s32.totalorder %s1047_s5, %s752_s7  ;;  %p757_p4 = scmp.lt.u32.totalorder %s1047_s5, %s1100_s3 }
 0x147   : > { %p758_p8 = scmp.lt.u32.totalorder %s756_s21, %s752_s7  ;;  %p760_p2 = scmp.lt.u32.totalorder %s752_s7, %s1047_s5 }
 0x148   : > { %p754_p1 = pnand %p753_p10, %p1111_p0 }
 0x149   : > { %p759_p13 = por %p758_p8, %p757_p4 }
 0x14a   : > { %p755_p3 = pneg %p754_p1 }
 0x14b   : > { %p761_p12 = por %p760_p2, %p759_p13 }
 0x14d   : > { %p762_p6 = pnand %p761_p12, %p755_p3 }
 0x14f   : > { %765 = shalt.err (!%p762_p6)
}
 0x150   : > { %s833_s6 = smov 64   ;;  %s834_s23 = smov 4  }
 0x151   : > { %606 = dma.vmem_to_hbm [thread:$0]  (%p1111_p0), %s1049_s18, 128, %s1047_s5, %s410_s15, %s833_s6, %s833_s6, %s834_s23  }
 0x152 PF: > { %p620_p7 = scmp.ge.s32.totalorder %s824_s17, 2  ;;  %s441_s30 = sand.u32 1, %s804_s12  }
 0x153   : > { %p1112_p9 = scmp.ne.s32.totalorder %s1106_s27, 0  ;;  %s442_s10 = scalar_lea.sflag [#allocation5], %s441_s30 }
 0x155   : > { %p616_p11 = pnand %p620_p7, %p1112_p9 }
 0x157   : > { %799 = dma.done.wait (!%p616_p11), %s442_s10, 128  }
 0x158   : > { %801 = vsyncadd (!%p616_p11), %s442_s10, 4294967168  ;;  %s22_s17 = sadd.s32 1, %s824_s17   ;;  %s1113_s12 = smov %s808_s13 }
 0x159   : > { %p19_p5 = scmp.ge.s32.totalorder %s22_s17, 5   ;;  %s1114_s13 = smov %s812_s14 }
 0x15a   : > { %s1115_s14 = smov %s911_s26  ;;  %s1116_s15 = smov %s820_s16 }
 0x15b   : > { %s1117_s16 = smov %s1119_s20  ;;  %21 = sbr.rel (!%p19_p5) target bundleno = 8 (0x8), region = 101 }
 0x162   :  { %447 = vsyncpa [#allocation4], 1 }
 0x163   :  { %449 = vsyncpa [#allocation4 + $0x1], 1 }
 0x164   :  { %450 = vsyncpa [#allocation7], 1 }
 0x165   :  { %452 = vsyncpa [#allocation7 + $0x1], 1 }
 0x166   :  { %453 = vsyncpa [#allocation5], 1 }
 0x167   :  { %455 = vsyncpa [#allocation5 + $0x1], 1 }

</bundles_post_ra>
